<compile_context>
chip_gen: v5e
topology: v5e:2x2
jax: 0.10.0
libtpu: 0.0.40
codegen_flags: <defaults>
</compile_context>

<pallas_src>
import jax
import jax.numpy as jnp
import numpy as np
from jax.experimental import pallas as pl
from jax.experimental.pallas import tpu as pltpu


def _fused_conv_matmul_kernel(p_ref, w_ref, o_ref):
    """One MXU matmul per grid step.

    p_ref: (TM, D_pad)     fused im2col patches (both branches, zero padded)
    w_ref: (D_pad, O_pad)  fused block-diagonal weight (zero padded)
    o_ref: (TM, O_pad)     lane-dense output slab
    """
    # act = Identity (default ConvLayer activation); a non-identity act would
    # be applied elementwise right here.
    o_ref[...] = jnp.dot(p_ref[...], w_ref[...],
                         preferred_element_type=jnp.float32).astype(o_ref.dtype)


def _round_up(v, m):
    return (v + m - 1) // m * m


def _im2col_nhwc(x_nchw, K):
    """(N, C, H, W) -> (N*H*W, K*K*C) 'same'-padded patches, feature order (ky, kx, c)."""
    N, C, H, W = x_nchw.shape
    p = K // 2
    x_nhwc = jnp.transpose(x_nchw, (0, 2, 3, 1))
    xp = jnp.pad(x_nhwc, ((0, 0), (p, p), (p, p), (0, 0)))
    cols = [xp[:, ky:ky + H, kx:kx + W, :] for ky in range(K) for kx in range(K)]
    return jnp.concatenate(cols, axis=-1).reshape(N * H * W, K * K * C)


def _weight_matrix(w_oihw):
    """(O, Cin, K, K) OIHW -> (K*K*Cin, O), feature order (ky, kx, c)."""
    O, Cin, K, _ = w_oihw.shape
    return jnp.transpose(w_oihw, (2, 3, 1, 0)).reshape(K * K * Cin, O)


def concat_layer_forward(x_nchw, w1_oihw, w2_oihw, *,
                         share_input=False, sum_output=False,
                         compute_dtype=jnp.float32):
    """ConcatLayer.forward.

    x_nchw  : (N, C, H, W), channel 0 is the const-1 channel.
    w1_oihw : (O1, in1, K1, K1)  eq_conv1 weight (PyTorch OIHW, bias-less).
    w2_oihw : (O2, in2, K2, K2)  eq_conv2 weight (PyTorch OIHW, bias-less).
    Returns : (N, O1+O2, H, W)  (or (N, O1, H, W) when sum_output).
    compute_dtype: use jnp.bfloat16 on v6e/v7x for 2x MXU throughput; f32 acc.
    """
    N, C, H, W = x_nchw.shape
    O1, in1, K1, _ = w1_oihw.shape
    O2, in2, K2, _ = w2_oihw.shape
    assert K1 % 2 == 1 and K2 % 2 == 1

    if share_input:
        assert in1 == in2 == C
        x1, x2 = x_nchw, x_nchw
    else:
        assert C + 1 == in1 + in2
        x1 = x_nchw[:, :in1]
        ones = jnp.ones_like(x_nchw[:, :1])
        x2 = jnp.concatenate([ones, x_nchw[:, in1:]], axis=1)  # pad_const_channel

    if sum_output:
        assert O1 == O2
        o_total = O1
    else:
        o_total = O1 + O2

    # ---- wrapper-side im2col: batch folded into matmul M dimension ----------
    P1 = _im2col_nhwc(x1, K1)                       # (M, D1)
    P2 = _im2col_nhwc(x2, K2)                       # (M, D2)
    D1, D2 = P1.shape[1], P2.shape[1]
    D = D1 + D2
    M = N * H * W
    P = jnp.concatenate([P1, P2], axis=-1)          # (M, D1+D2)

    # ---- fuse both branch weights into one matrix ----------------------------
    W1 = _weight_matrix(w1_oihw)                    # (D1, O1)
    W2 = _weight_matrix(w2_oihw)                    # (D2, O2)
    if sum_output:
        Wf = jnp.concatenate([W1, W2], axis=0)      # (D1+D2, O1): P @ Wf = y1 + y2
    else:
        # block-diagonal -> single matmul directly yields concat([y1, y2], ch)
        Wf = jnp.zeros((D, O1 + O2), dtype=W1.dtype)
        Wf = Wf.at[:D1, :O1].set(W1)
        Wf = Wf.at[D1:, O1:].set(W2)

    # ---- pad to TPU-friendly, lane-dense shapes ------------------------------
    D_pad = _round_up(D, 128)
    O_pad = _round_up(o_total, 128)
    if M <= 512:
        TM = _round_up(max(M, 8), 8)
        M_pad = TM
    else:
        TM = 512                                    # ~0.5 MB/operand block; fits v7x VMEM
        M_pad = _round_up(M, TM)

    P = jnp.pad(P, ((0, M_pad - M), (0, D_pad - D))).astype(compute_dtype)
    Wf = jnp.pad(Wf, ((0, D_pad - D), (0, O_pad - o_total))).astype(compute_dtype)

    out_flat = pl.pallas_call(
        _fused_conv_matmul_kernel,
        out_shape=jax.ShapeDtypeStruct((M_pad, O_pad), x_nchw.dtype),
        grid_spec=pltpu.PrefetchScalarGridSpec(
            num_scalar_prefetch=0,
            grid=(M_pad // TM,),
            in_specs=[
                pl.BlockSpec((TM, D_pad), lambda m: (m, 0)),
                pl.BlockSpec((D_pad, O_pad), lambda m: (0, 0)),
            ],
            out_specs=pl.BlockSpec((TM, O_pad), lambda m: (m, 0)),
        ),
        compiler_params=pltpu.CompilerParams(
            dimension_semantics=("parallel",),
            vmem_limit_bytes=32 * 1024 * 1024,
        ),
    )(P, Wf)

    # TODO(synk): if the wrapped layers carried a non-identity activation, it
    # would be applied here (or fused into the kernel store).

    out = out_flat[:M, :o_total].reshape(N, H, W, o_total)
    return jnp.transpose(out, (0, 3, 1, 2))         # NHWC -> NCHW


def _reference_forward(x_nchw, w1, w2, *, share_input=False, sum_output=False):
    """Pure-JAX reference (lax conv) for correctness checking."""
    in1 = w1.shape[1]
    if share_input:
        x1, x2 = x_nchw, x_nchw
    else:
        ones = jnp.ones_like(x_nchw[:, :1])
        x1 = x_nchw[:, :in1]
        x2 = jnp.concatenate([ones, x_nchw[:, in1:]], axis=1)
    dn = jax.lax.conv_dimension_numbers(x1.shape, w1.shape, ("NCHW", "OIHW", "NCHW"))
    y1 = jax.lax.conv_general_dilated(x1, w1, (1, 1), "SAME", dimension_numbers=dn)
    dn2 = jax.lax.conv_dimension_numbers(x2.shape, w2.shape, ("NCHW", "OIHW", "NCHW"))
    y2 = jax.lax.conv_general_dilated(x2, w2, (1, 1), "SAME", dimension_numbers=dn2)
    if sum_output:
        return y1 + y2
    return jnp.concatenate([y1, y2], axis=1)


if __name__ == "__main__":
    key = jax.random.PRNGKey(0)
    k_x, k_w1, k_w2 = jax.random.split(key, 3)

    # ConcatLayer config (default flags): share_input=False, sum_output=False
    # eq_conv1: in_channels=5 (4 data + 1 const), out_channels=4, kernel 3x3
    # eq_conv2: in_channels=4 (3 data + 1 const), out_channels=4, kernel 3x3
    N, H, W = 2, 8, 8
    in1, in2 = 5, 4
    O1, O2 = 4, 4
    K = 3
    C = in1 + in2 - 1  # input channels incl. the const-1 channel at index 0

    x = jax.random.normal(k_x, (N, C, H, W), dtype=jnp.float32)
    x = x.at[:, 0].set(1.0)  # const-1 channel at channel 0 (module convention)

    # Deterministic synthetic eq_conv weights (bias-less convs from simplify_layer)
    w1 = jax.random.normal(k_w1, (O1, in1, K, K), dtype=jnp.float32) * 0.1
    w2 = jax.random.normal(k_w2, (O2, in2, K, K), dtype=jnp.float32) * 0.1

    out = concat_layer_forward(x, w1, w2, share_input=False, sum_output=False)
    out = jax.block_until_ready(out)

    ref = _reference_forward(x, w1, w2, share_input=False, sum_output=False)
    np.testing.assert_allclose(np.asarray(out), np.asarray(ref),
                               rtol=1e-4, atol=1e-4)

    # also exercise the sum_output fusion path
    out_sum = jax.block_until_ready(
        concat_layer_forward(x, w1, w2, share_input=False, sum_output=True))
    ref_sum = _reference_forward(x, w1, w2, share_input=False, sum_output=True)
    np.testing.assert_allclose(np.asarray(out_sum), np.asarray(ref_sum),
                               rtol=1e-4, atol=1e-4)

    assert out.shape == (N, O1 + O2, H, W)
    assert out_sum.shape == (N, O1, H, W)
    print("KERNEL_OK")
</pallas_src>

<mosaic_0001>
module attributes {stable_mosaic.version = 11 : i64} {
  func.func @_fused_conv_matmul_kernel(%arg0: i32, %arg1: memref<128x128xf32, #tpu.memory_space<vmem>>, %arg2: memref<128x128xf32, #tpu.memory_space<vmem>>, %arg3: memref<128x128xf32, #tpu.memory_space<vmem>>) attributes {dimension_semantics = [#tpu.dimension_semantics<parallel>], iteration_bounds = array<i64: 1>, scalar_prefetch = 0 : i64, scratch_operands = 0 : i64, tpu.core_type = #tpu.core_type<tc>, window_params = [{transform_indices = @transform_0, window_bounds = array<i64: 128, 128>}, {pipeline_mode = #tpu.pipeline_mode<synchronous>, transform_indices = @transform_1, window_bounds = array<i64: 128, 128>}, {transform_indices = @transform_2, window_bounds = array<i64: 128, 128>}]} {
    %c0 = arith.constant 0 : index
    %c0_0 = arith.constant 0 : index
    %0 = vector.load %arg1[%c0, %c0_0] : memref<128x128xf32, #tpu.memory_space<vmem>>, vector<128x128xf32>
    %c0_1 = arith.constant 0 : index
    %c0_2 = arith.constant 0 : index
    %1 = vector.load %arg2[%c0_1, %c0_2] : memref<128x128xf32, #tpu.memory_space<vmem>>, vector<128x128xf32>
    %cst = arith.constant dense<0.000000e+00> : vector<128x128xf32>
    %2 = tpu.matmul %0, %1, %cst {dimension_numbers = #tpu.dot_dimension_numbers<[1], [0], [0], [1], [0, 0, 1, 1], [], []>} : vector<128x128xf32>, vector<128x128xf32>, vector<128x128xf32> -> vector<128x128xf32>
    %c0_3 = arith.constant 0 : index
    %c0_4 = arith.constant 0 : index
    %3 = vector.load %arg3[%c0_3, %c0_4] : memref<128x128xf32, #tpu.memory_space<vmem>>, vector<128x128xf32>
    tpu.vector_store %arg3[%c0_3, %c0_4], %2 {strides = array<i32>} : memref<128x128xf32, #tpu.memory_space<vmem>>, vector<128x128xf32>,
    return
  }
  func.func @transform_0(%arg0: i32) -> (i32, i32) {
    %c0_i32 = arith.constant 0 : i32
    %c0_i32_0 = arith.constant 0 : i32
    return %arg0, %c0_i32 : i32, i32
  }
  func.func @transform_1(%arg0: i32) -> (i32, i32) {
    %c0_i32 = arith.constant 0 : i32
    %c0_i32_0 = arith.constant 0 : i32
    %c0_i32_1 = arith.constant 0 : i32
    return %c0_i32, %c0_i32_0 : i32, i32
  }
  func.func @transform_2(%arg0: i32) -> (i32, i32) {
    %c0_i32 = arith.constant 0 : i32
    %c0_i32_0 = arith.constant 0 : i32
    return %arg0, %c0_i32 : i32, i32
  }
}

</mosaic_0001>

<bundles_post_ra>
// kernel: tpu_custom_call.1
= control target key start
LH: loop header
LB: loop body
LE: loop exit
PB: predicated region body
PF: predicated region fallthrough
CT: control target
= control target key end

     0   :  { %7 = vsyncpa [#allocation3], 0  ;;  %s346_s0 = inlined_call_operand.hbm [shape: f32[128,128], index: 0, kind: input, shape index: {}]   ;;  %s347_s1 = inlined_call_operand.hbm [shape: f32[128,128], index: 1, kind: input, shape index: {}]   ;;  %s348_s2 = inlined_call_operand.hbm [shape: f32[128,128], index: 2, kind: output, shape index: {}]  }
   0x1   :  { %8 = vsyncpa [#allocation6], 0 }
   0x2   :  { %9 = vsyncpa [#allocation4], 0  ;;  %s14_s11 = sshll.u32 %s346_s0, 4  ;;  %s308_s12 = smov [#allocation2]   ;;  %s15_s11 = int_to_ptr.hbm [resolvable:$true] %s14_s11 }
   0x3   :  { %s16_s13 = sshll.u32 %s308_s12, 4  ;;  %s27_s16 = sshll.u32 %s347_s1, 4  ;;  %s17_s13 = int_to_ptr.vmem [resolvable:$true] %s16_s13  ;;  %s28_s16 = int_to_ptr.hbm [resolvable:$true] %s27_s16 }
   0x4   :  { %s309_s17 = smov 128   ;;  %s310_s18 = smov 8  }
   0x5   :  { %22 = dma.hbm_to_vmem [thread:$0]  %s15_s11, 2048, %s17_s13, [#allocation3], %s309_s17, %s309_s17, %s310_s18  }
   0x6   :  { %s311_s19 = smov [#allocation5]  }
   0x7   :  { %s29_s20 = sshll.u32 %s311_s19, 4  ;;  %s30_s20 = int_to_ptr.vmem [resolvable:$true] %s29_s20 }
   0x8   :  { %35 = dma.hbm_to_vmem [thread:$0]  %s28_s16, 2048, %s30_s20, [#allocation6], %s309_s17, %s309_s17, %s310_s18  }
   0x9   :  { %302 = dma.done.wait [#allocation3], 2048  }
   0xa   :  { %303 = vsyncadd [#allocation3], 4294965248 }
   0xb   :  { %304 = dma.done.wait [#allocation6], 2048  }
   0xc   :  { %305 = vsyncadd [#allocation6], 4294965248  ;;  %v75_v0 = vld [vmem:[#allocation5 + $0x78] sm:$0xff]  ;;  %v74_v1 = vld [vmem:[#allocation5 + $0x70] sm:$0xff]  ;;  %s312_s0 = smov [#allocation7]   ;;  %s163_s23 = sshll.u32 %s348_s2, 4  ;;  %s164_s23 = int_to_ptr.hbm [resolvable:$true] %s163_s23 }
   0xd   :  { %178 = vmatpush.msra.mxu2 %v75_v0  ;;  %179 = vmatpush.msra.mxu3 %v75_v0  ;;  %v73_v2 = vld [vmem:[#allocation5 + $0x68] sm:$0xff]  ;;  %v72_v3 = vld [vmem:[#allocation5 + $0x60] sm:$0xff]  ;;  %v71_v4 = vld [vmem:[#allocation5 + $0x58] sm:$0xff]  ;;  %s161_s1 = sshll.u32 %s312_s0, 4  ;;  %s162_s1 = int_to_ptr.vmem [resolvable:$true] %s161_s1 }
   0xe   :  { %76 = vmatpush.msra.mxu0 %v75_v0  ;;  %177 = vmatpush.msra.mxu1 %v75_v0  ;;  %v70_v5 = vld [vmem:[#allocation5 + $0x50] sm:$0xff]  ;;  %v69_v6 = vld [vmem:[#allocation5 + $0x48] sm:$0xff]  ;;  %v68_v7 = vld [vmem:[#allocation5 + $0x40] sm:$0xff] }
   0xf   :  { %181 = vmatpush.msra.mxu2 %v74_v1  ;;  %182 = vmatpush.msra.mxu3 %v74_v1  ;;  %v67_v8 = vld [vmem:[#allocation5 + $0x38] sm:$0xff]  ;;  %v66_v9 = vld [vmem:[#allocation5 + $0x30] sm:$0xff]  ;;  %v65_v10 = vld [vmem:[#allocation5 + $0x28] sm:$0xff] }
  0x10   :  { %77 = vmatpush.msra.mxu0 %v74_v1  ;;  %180 = vmatpush.msra.mxu1 %v74_v1  ;;  %v64_v11 = vld [vmem:[#allocation5 + $0x20] sm:$0xff]  ;;  %v63_v12 = vld [vmem:[#allocation5 + $0x18] sm:$0xff]  ;;  %v62_v13 = vld [vmem:[#allocation5 + $0x10] sm:$0xff] }
  0x11   :  { %184 = vmatpush.msra.mxu2 %v73_v2  ;;  %185 = vmatpush.msra.mxu3 %v73_v2  ;;  %v61_v14 = vld [vmem:[#allocation5 + $0x8] sm:$0xff]  ;;  %v60_v15 = vld [vmem:[#allocation5] sm:$0xff]  ;;  %v54_v24 = vld [vmem:[#allocation2 + $0x50] sm:$0xff] }
  0x12   :  { %78 = vmatpush.msra.mxu0 %v73_v2  ;;  %183 = vmatpush.msra.mxu1 %v73_v2  ;;  %v52_v16 = vld [vmem:[#allocation2 + $0x40] sm:$0xff]  ;;  %v53_v20 = vld [vmem:[#allocation2 + $0x48] sm:$0xff]  ;;  %v58_v25 = vld [vmem:[#allocation2 + $0x70] sm:$0xff] }
  0x13   :  { %187 = vmatpush.msra.mxu2 %v72_v3  ;;  %188 = vmatpush.msra.mxu3 %v72_v3  ;;  %v56_v17 = vld [vmem:[#allocation2 + $0x60] sm:$0xff]  ;;  %v57_v21 = vld [vmem:[#allocation2 + $0x68] sm:$0xff]  ;;  %v46_v26 = vld [vmem:[#allocation2 + $0x10] sm:$0xff] }
  0x14   :  { %79 = vmatpush.msra.mxu0 %v72_v3  ;;  %186 = vmatpush.msra.mxu1 %v72_v3  ;;  %v44_v18 = vld [vmem:[#allocation2] sm:$0xff]  ;;  %v45_v22 = vld [vmem:[#allocation2 + $0x8] sm:$0xff]  ;;  %v50_v27 = vld [vmem:[#allocation2 + $0x30] sm:$0xff] }
  0x15   :  { %190 = vmatpush.msra.mxu2 %v71_v4  ;;  %191 = vmatpush.msra.mxu3 %v71_v4  ;;  %v48_v19 = vld [vmem:[#allocation2 + $0x20] sm:$0xff]  ;;  %v49_v23 = vld [vmem:[#allocation2 + $0x28] sm:$0xff]  ;;  %v55_v28 = vld [vmem:[#allocation2 + $0x58] sm:$0xff] }
  0x16   :  { %80 = vmatpush.msra.mxu0 %v71_v4  ;;  %189 = vmatpush.msra.mxu1 %v71_v4  ;;  %v59_v29 = vld [vmem:[#allocation2 + $0x78] sm:$0xff] }
  0x17   :  { %193 = vmatpush.msra.mxu2 %v70_v5  ;;  %194 = vmatpush.msra.mxu3 %v70_v5  ;;  %v47_v30 = vld [vmem:[#allocation2 + $0x18] sm:$0xff] }
  0x18   :  { %81 = vmatpush.msra.mxu0 %v70_v5  ;;  %192 = vmatpush.msra.mxu1 %v70_v5  ;;  %v51_v31 = vld [vmem:[#allocation2 + $0x38] sm:$0xff] }
  0x19   :  { %196 = vmatpush.msra.mxu2 %v69_v6  ;;  %197 = vmatpush.msra.mxu3 %v69_v6 }
  0x1a   :  { %82 = vmatpush.msra.mxu0 %v69_v6  ;;  %195 = vmatpush.msra.mxu1 %v69_v6 }
  0x1b   :  { %199 = vmatpush.msra.mxu2 %v68_v7  ;;  %200 = vmatpush.msra.mxu3 %v68_v7 }
  0x1c   :  { %83 = vmatpush.msra.mxu0 %v68_v7  ;;  %198 = vmatpush.msra.mxu1 %v68_v7 }
  0x1d   :  { %202 = vmatpush.msra.mxu2 %v67_v8  ;;  %203 = vmatpush.msra.mxu3 %v67_v8 }
  0x1e   :  { %84 = vmatpush.msra.mxu0 %v67_v8  ;;  %201 = vmatpush.msra.mxu1 %v67_v8 }
  0x1f   :  { %205 = vmatpush.msra.mxu2 %v66_v9  ;;  %206 = vmatpush.msra.mxu3 %v66_v9 }
  0x20   :  { %85 = vmatpush.msra.mxu0 %v66_v9  ;;  %204 = vmatpush.msra.mxu1 %v66_v9 }
  0x21   :  { %208 = vmatpush.msra.mxu2 %v65_v10  ;;  %209 = vmatpush.msra.mxu3 %v65_v10 }
  0x22   :  { %86 = vmatpush.msra.mxu0 %v65_v10  ;;  %207 = vmatpush.msra.mxu1 %v65_v10 }
  0x23   :  { %211 = vmatpush.msra.mxu2 %v64_v11  ;;  %212 = vmatpush.msra.mxu3 %v64_v11 }
  0x24   :  { %87 = vmatpush.msra.mxu0 %v64_v11  ;;  %210 = vmatpush.msra.mxu1 %v64_v11 }
  0x25   :  { %214 = vmatpush.msra.mxu2 %v63_v12  ;;  %215 = vmatpush.msra.mxu3 %v63_v12 }
  0x26   :  { %88 = vmatpush.msra.mxu0 %v63_v12  ;;  %213 = vmatpush.msra.mxu1 %v63_v12 }
  0x27   :  { %217 = vmatpush.msra.mxu2 %v62_v13  ;;  %218 = vmatpush.msra.mxu3 %v62_v13 }
  0x28   :  { %89 = vmatpush.msra.mxu0 %v62_v13  ;;  %216 = vmatpush.msra.mxu1 %v62_v13 }
  0x29   :  { %220 = vmatpush.msra.mxu2 %v61_v14  ;;  %221 = vmatpush.msra.mxu3 %v61_v14 }
  0x2a   :  { %90 = vmatpush.msra.mxu0 %v61_v14  ;;  %219 = vmatpush.msra.mxu1 %v61_v14 }
  0x2b   :  { %223 = vmatpush.msra.mxu2 %v60_v15  ;;  %224 = vmatpush.msra.mxu3 %v60_v15 }
  0x2c   :  { %116 = vmatmul.f32.vlgmr.msra.gmra.mxu2 %v52_v16  ;;  %128 = vmatmul.f32.vlgmr.msra.gmra.mxu3 %v56_v17 }
  0x2d   :  { %91 = vmatpush.msra.mxu0 %v60_v15  ;;  %222 = vmatpush.msra.mxu1 %v60_v15 }
  0x2e   :  { %92 = vmatmul.f32.vlgmr.msra.gmra.mxu0 %v44_v18  ;;  %104 = vmatmul.f32.vlgmr.msra.gmra.mxu1 %v48_v19 }
  0x34   :  { %119 = vmatmul.f32.gmra.mxu2 %v53_v20  ;;  %131 = vmatmul.f32.gmra.mxu3 %v57_v21 }
  0x36   :  { %95 = vmatmul.f32.gmra.mxu0 %v45_v22  ;;  %107 = vmatmul.f32.gmra.mxu1 %v49_v23 }
  0x3c   :  { %122 = vmatmul.f32.gmra.mxu2 %v54_v24  ;;  %134 = vmatmul.f32.gmra.mxu3 %v58_v25 }
  0x3e   :  { %98 = vmatmul.f32.gmra.mxu0 %v46_v26  ;;  %110 = vmatmul.f32.gmra.mxu1 %v50_v27 }
  0x44   :  { %125 = vmatmul.f32.gmra.mxu2 %v55_v28  ;;  %137 = vmatmul.f32.gmra.mxu3 %v59_v29 }
  0x46   :  { %101 = vmatmul.f32.gmra.mxu0 %v47_v30  ;;  %113 = vmatmul.f32.gmra.mxu1 %v51_v31 }
  0xab   :  { %v93_v32 = vpop.f32.mrf.mxu0  ;;  %v105_v33 = vpop.f32.mrf.mxu1 }
  0xac   :  { %141 = vst [vmem:[#allocation7] sm:$0xff] %v93_v32 }
  0xad   :  { %145 = vst [vmem:[#allocation7 + $0x20] sm:$0xff] %v105_v33 }
  0xaf   :  { %v117_v34 = vpop.f32.mrf.mxu2  ;;  %v129_v35 = vpop.f32.mrf.mxu3 }
  0xb0   :  { %149 = vst [vmem:[#allocation7 + $0x40] sm:$0xff] %v117_v34 }
  0xb1   :  { %153 = vst [vmem:[#allocation7 + $0x60] sm:$0xff] %v129_v35 }
  0xb3   :  { %v96_v36 = vpop.f32.mrf.mxu0  ;;  %v108_v37 = vpop.f32.mrf.mxu1 }
  0xb4   :  { %142 = vst [vmem:[#allocation7 + $0x8] sm:$0xff] %v96_v36 }
  0xb5   :  { %146 = vst [vmem:[#allocation7 + $0x28] sm:$0xff] %v108_v37 }
  0xb7   :  { %v120_v38 = vpop.f32.mrf.mxu2  ;;  %v132_v39 = vpop.f32.mrf.mxu3 }
  0xb8   :  { %150 = vst [vmem:[#allocation7 + $0x48] sm:$0xff] %v120_v38 }
  0xb9   :  { %154 = vst [vmem:[#allocation7 + $0x68] sm:$0xff] %v132_v39 }
  0xbb   :  { %v99_v40 = vpop.f32.mrf.mxu0  ;;  %v111_v41 = vpop.f32.mrf.mxu1 }
  0xbc   :  { %143 = vst [vmem:[#allocation7 + $0x10] sm:$0xff] %v99_v40 }
  0xbd   :  { %147 = vst [vmem:[#allocation7 + $0x30] sm:$0xff] %v111_v41 }
  0xbf   :  { %v123_v42 = vpop.f32.mrf.mxu2  ;;  %v135_v43 = vpop.f32.mrf.mxu3 }
  0xc0   :  { %151 = vst [vmem:[#allocation7 + $0x50] sm:$0xff] %v123_v42 }
  0xc1   :  { %155 = vst [vmem:[#allocation7 + $0x70] sm:$0xff] %v135_v43 }
  0xc3   :  { %v102_v44 = vpop.f32.mrf.mxu0  ;;  %v114_v45 = vpop.f32.mrf.mxu1 }
  0xc4   :  { %144 = vst [vmem:[#allocation7 + $0x18] sm:$0xff] %v102_v44 }
  0xc5   :  { %148 = vst [vmem:[#allocation7 + $0x38] sm:$0xff] %v114_v45 }
  0xc7   :  { %v126_v46 = vpop.f32.mrf.mxu2  ;;  %v138_v47 = vpop.f32.mrf.mxu3 }
  0xc8   :  { %152 = vst [vmem:[#allocation7 + $0x58] sm:$0xff] %v126_v46 }
  0xc9   :  { %156 = vst [vmem:[#allocation7 + $0x78] sm:$0xff] %v138_v47 }
  0xca   :  { %169 = dma.vmem_to_hbm [thread:$0]  %s162_s1, 2048, %s164_s23, [#allocation4], %s309_s17, %s309_s17, %s310_s18  }
  0xcb   :  { %306 = dma.done.wait [#allocation4], 2048  }
  0xcc   :  { %307 = vsyncadd [#allocation4], 4294965248 }
  0xcd   :  { %174 = vsyncpa [#allocation3], 1 }
  0xce   :  { %175 = vsyncpa [#allocation6], 1 }
  0xcf   :  { %176 = vsyncpa [#allocation4], 1 }

</bundles_post_ra>
